<compile_context>
chip_gen: v7x
topology: tpu7x:2x2x1
jax: 0.10.0
libtpu: 0.0.40
codegen_flags: <defaults>
</compile_context>

<pallas_src>
import functools
import math

import jax
import jax.numpy as jnp
from jax import lax
from jax.experimental import pallas as pl
from jax.experimental.pallas import tpu as pltpu


def _make_pe(max_len: int, d_model: int, dtype=jnp.float32) -> jnp.ndarray:
    """Deterministic sinusoidal positional-encoding table (== PyTorch buffer)."""
    position = jnp.arange(max_len, dtype=jnp.float32)[:, None]               # [L, 1]
    div_term = jnp.exp(
        jnp.arange(0, d_model, 2, dtype=jnp.float32) * (-math.log(10000.0) / d_model)
    )                                                                        # [D/2]
    angles = position * div_term                                             # [L, D/2]
    pe = jnp.zeros((max_len, d_model), jnp.float32)
    pe = pe.at[:, 0::2].set(jnp.sin(angles))
    pe = pe.at[:, 1::2].set(jnp.cos(angles))
    return pe.astype(dtype)


def _vmem_capacity_bytes() -> int:
    """Trace-time VMEM capacity query; conservative fallback = v7x per-TC 64 MiB."""
    try:
        info = pltpu.get_tpu_info()
        cap = getattr(info, "vmem_capacity_bytes", None)
        if cap:
            return int(cap)
    except Exception:
        pass
    return 64 << 20


def _pe_kernel(seed_ref, x_ref, pe_ref, o_ref, *,
               threshold: int, scale: float, train: bool,
               tile_b: int, tile_s: int, s2: int, d2: int):
    """Elementwise hot path: y = x + pe (f32), then optional inverted dropout."""
    x = x_ref[...]                                   # (tile_b, tile_s, d2)
    pe = pe_ref[...]                                 # (tile_s, d2), float32
    y = x.astype(jnp.float32) + pe[None, :, :]

    if train:
        if threshold >= (1 << 32):                   # p >= 1.0: drop everything
            y = jnp.zeros_like(y)
        elif threshold > 0:
            si = pl.program_id(0).astype(jnp.uint32)  # seq-tile index
            bi = pl.program_id(1).astype(jnp.uint32)  # batch-tile index
            b_io = lax.broadcasted_iota(jnp.uint32, y.shape, 0)
            r_io = lax.broadcasted_iota(jnp.uint32, y.shape, 1)
            c_io = lax.broadcasted_iota(jnp.uint32, y.shape, 2)
            g_b = bi * jnp.uint32(tile_b) + b_io
            g_r = si * jnp.uint32(tile_s) + r_io
            # TODO(synk): 32-bit element counter wraps for B*S*D >= 2**32; use a
            # per-tile reseed / 64-bit fold for tensors that large.
            idx = (g_b * jnp.uint32(s2) + g_r) * jnp.uint32(d2) + c_io
            # splitmix32-style stateless hash (pure VPU int ops).
            seed_u = seed_ref[0].astype(jnp.uint32)
            h = idx + seed_u * jnp.uint32(0x9E3779B9)
            h = h ^ (h >> 16)
            h = h * jnp.uint32(0x7FEB352D)
            h = h ^ (h >> 15)
            h = h * jnp.uint32(0x846CA68B)
            h = h ^ (h >> 16)
            # Integer-domain compare: keep with probability 1 - p; fold 1/(1-p)
            # scale directly into the select (no uint->float convert).
            keep = h >= jnp.uint32(threshold)
            y = y * jnp.where(keep, jnp.float32(scale), jnp.float32(0.0))

    o_ref[...] = y.astype(o_ref.dtype)


def _choose_tiles(B: int, S2: int, D2: int, itemsize: int, budget: int):
    """Pick (tile_b, tile_s) so one x block stays under `budget` bytes."""
    row_bytes = D2 * itemsize
    batch_bytes = S2 * row_bytes
    pack = max(8, 32 // itemsize)              # sublane packing (f32:8, bf16:16, i8:32)
    if batch_bytes <= budget:
        # Whole (S2, D2) slab fits: fold as many batches as possible into one block.
        tile_s = S2
        tile_b = min(B, max(1, budget // max(batch_bytes, 1)))
        while B % tile_b:
            tile_b -= 1
    else:
        # Tile the sequence; keep tile_s a multiple of the sublane pack.
        tile_b = 1
        rows = max(pack, (budget // row_bytes) // pack * pack)
        tile_s = min(rows, S2) if rows < S2 else rows
    return tile_b, tile_s


def positional_encoding(
    x: jnp.ndarray,
    pe: jnp.ndarray,
    *,
    dropout_p: float = 0.1,
    train: bool = False,
    seed: int = 0,
) -> jnp.ndarray:
    """x: [B, S, D]; pe: [max_len, D]. Returns dropout(x + pe[:S]) in x.dtype."""
    B, S, D = x.shape
    max_len, d_pe = pe.shape
    assert S <= max_len and d_pe == D

    # ---- lane-dense folding: make the trailing dim a multiple of 128 ------------
    k = 1 if D % 128 == 0 else 128 // math.gcd(D, 128)
    D2 = k * D
    S2 = -(-S // k)                              # ceil(S / k) folded rows
    itemsize = jnp.dtype(x.dtype).itemsize

    # ---- generation-aware VMEM budget -------------------------------------------
    vmem_cap = _vmem_capacity_bytes()
    vmem_limit = int(min((vmem_cap * 3) // 4, 96 << 20))
    # live VMEM ~ 2*(x) + 2*(out) + 2*(pe, f32) per block -> keep block <= limit/8
    block_budget = max(vmem_limit // 8, 1 << 20)

    tile_b, tile_s = _choose_tiles(B, S2, D2, itemsize, block_budget)
    S2_pad = -(-S2 // tile_s) * tile_s           # pad folded seq to tile multiple
    S_total = S2_pad * k

    # ---- pad + reshape to lane-dense layout (free row-major views) --------------
    xp = x if S_total == S else jnp.pad(x, ((0, 0), (0, S_total - S), (0, 0)))
    x2 = xp.reshape(B, S2_pad, D2)
    pe_s = pe[:S].astype(jnp.float32)            # keep pe in f32 (matches PyTorch add)
    if S_total != S:
        pe_s = jnp.pad(pe_s, ((0, S_total - S), (0, 0)))
    pe2 = pe_s.reshape(S2_pad, D2)

    p = float(dropout_p)
    threshold = int(round(p * (1 << 32))) if (train and p > 0.0) else 0
    scale = 1.0 / (1.0 - p) if p < 1.0 else 0.0

    seed_arr = jnp.array([seed], dtype=jnp.int32)
    kernel = functools.partial(
        _pe_kernel, threshold=threshold, scale=scale, train=bool(train),
        tile_b=tile_b, tile_s=tile_s, s2=S2_pad, d2=D2,
    )

    # Grid: (seq tiles, batch tiles); pe block index is constant across the inner
    # batch axis so it is not re-DMA'd per batch step. Both axes are elementwise-
    # independent -> "parallel" so v7x megacore can shard either one.
    # TODO(synk): for B == 1 the pe read equals the x read; synthesizing pe in-kernel
    # (iota + sin/cos on the EUP) would halve HBM read traffic for that case.
    grid = (S2_pad // tile_s, B // tile_b)
    grid_spec = pltpu.PrefetchScalarGridSpec(
        num_scalar_prefetch=1,
        grid=grid,
        in_specs=[
            pl.BlockSpec((tile_b, tile_s, D2), lambda s, b, seed: (b, s, 0)),   # x
            pl.BlockSpec((tile_s, D2), lambda s, b, seed: (s, 0)),              # pe
        ],
        out_specs=pl.BlockSpec((tile_b, tile_s, D2), lambda s, b, seed: (b, s, 0)),
    )

    out2 = pl.pallas_call(
        kernel,
        grid_spec=grid_spec,
        out_shape=jax.ShapeDtypeStruct((B, S2_pad, D2), x.dtype),
        compiler_params=pltpu.CompilerParams(
            dimension_semantics=("parallel", "parallel"),
            vmem_limit_bytes=vmem_limit,
        ),
    )(seed_arr, x2, pe2)

    out = out2.reshape(B, S_total, D)
    if S_total != S:
        out = out[:, :S, :]
    return out


if __name__ == "__main__":
    key = jax.random.PRNGKey(0)
    batch, seq_len, d_model, max_len = 2, 8, 32, 64

    x = jax.random.normal(key, (batch, seq_len, d_model), dtype=jnp.float32)
    pe = _make_pe(max_len, d_model)

    # Eval mode (dropout is identity): must match x + pe.
    y_eval = positional_encoding(x, pe, dropout_p=0.1, train=False)
    y_eval = jax.block_until_ready(y_eval)
    ref = x + pe[None, :seq_len, :]
    assert y_eval.shape == x.shape and y_eval.dtype == x.dtype
    assert jnp.allclose(y_eval, ref, atol=1e-6, rtol=1e-6)

    # Train mode: every element is either exactly 0 (dropped) or ref / (1-p) (kept).
    p = 0.1
    y_train = positional_encoding(x, pe, dropout_p=p, train=True, seed=1234)
    y_train = jax.block_until_ready(y_train)
    assert y_train.shape == x.shape
    kept_ok = jnp.isclose(y_train, ref / (1.0 - p), atol=1e-5, rtol=1e-5)
    dropped_ok = (y_train == 0.0)
    assert bool(jnp.all(kept_ok | dropped_ok))

    print("KERNEL_OK")
</pallas_src>

<mosaic_0001>
module attributes {stable_mosaic.version = 11 : i64} {
  func.func @_pe_kernel(%arg0: i32, %arg1: i32, %arg2: memref<1xi32, #tpu.memory_space<smem>>, %arg3: memref<2x2x128xf32, #tpu.memory_space<vmem>>, %arg4: memref<2x128xf32, #tpu.memory_space<vmem>>, %arg5: memref<2x2x128xf32, #tpu.memory_space<vmem>>) attributes {dimension_semantics = [#tpu.dimension_semantics<parallel>, #tpu.dimension_semantics<parallel>], iteration_bounds = array<i64: 1, 1>, scalar_prefetch = 1 : i64, scratch_operands = 0 : i64, tpu.core_type = #tpu.core_type<tc>, window_params = [{transform_indices = @transform_0, window_bounds = array<i64: 2, 2, 128>}, {transform_indices = @transform_1, window_bounds = array<i64: 2, 128>}, {transform_indices = @transform_2, window_bounds = array<i64: 2, 2, 128>}]} {
    %c0 = arith.constant 0 : index
    %c0_0 = arith.constant 0 : index
    %c0_1 = arith.constant 0 : index
    %0 = vector.load %arg3[%c0, %c0_0, %c0_1] : memref<2x2x128xf32, #tpu.memory_space<vmem>>, vector<2x2x128xf32>
    %c0_2 = arith.constant 0 : index
    %c0_3 = arith.constant 0 : index
    %1 = vector.load %arg4[%c0_2, %c0_3] : memref<2x128xf32, #tpu.memory_space<vmem>>, vector<2x128xf32>
    %2 = vector.shape_cast %1 : vector<2x128xf32> to vector<1x2x128xf32>
    %3 = vector.broadcast %2 : vector<1x2x128xf32> to vector<2x2x128xf32>
    %4 = arith.addf %0, %3 : vector<2x2x128xf32>
    %c0_4 = arith.constant 0 : index
    %c0_5 = arith.constant 0 : index
    %c0_6 = arith.constant 0 : index
    %5 = vector.load %arg5[%c0_4, %c0_5, %c0_6] : memref<2x2x128xf32, #tpu.memory_space<vmem>>, vector<2x2x128xf32>
    tpu.vector_store %arg5[%c0_4, %c0_5, %c0_6], %4 {strides = array<i32>} : memref<2x2x128xf32, #tpu.memory_space<vmem>>, vector<2x2x128xf32>,
    return
  }
  func.func @transform_0(%arg0: i32, %arg1: i32, %arg2: memref<1xi32, #tpu.memory_space<smem>>) -> (i32, i32, i32) {
    %c0_i32 = arith.constant 0 : i32
    %c0_i32_0 = arith.constant 0 : i32
    return %arg1, %arg0, %c0_i32 : i32, i32, i32
  }
  func.func @transform_1(%arg0: i32, %arg1: i32, %arg2: memref<1xi32, #tpu.memory_space<smem>>) -> (i32, i32) {
    %c0_i32 = arith.constant 0 : i32
    %c0_i32_0 = arith.constant 0 : i32
    return %arg0, %c0_i32 : i32, i32
  }
  func.func @transform_2(%arg0: i32, %arg1: i32, %arg2: memref<1xi32, #tpu.memory_space<smem>>) -> (i32, i32, i32) {
    %c0_i32 = arith.constant 0 : i32
    %c0_i32_0 = arith.constant 0 : i32
    return %arg1, %arg0, %c0_i32 : i32, i32, i32
  }
}

</mosaic_0001>

<bundles_post_ra>
// kernel: tpu_custom_call.1
= control target key start
LH: loop header
LB: loop body
LE: loop exit
PB: predicated region body
PF: predicated region fallthrough
CT: control target
= control target key end

     0   :  { %9 = vsyncpa [#allocation5], 0  ;;  %s161_s0 = inlined_call_operand.<no memory space> [shape: s32[1], index: 0, kind: input, shape index: {}]   ;;  %s162_s1 = inlined_call_operand.hbm [shape: f32[2,2,128], index: 1, kind: input, shape index: {}]   ;;  %s163_s2 = inlined_call_operand.vmem [shape: f32[2,128], index: 2, kind: input, shape index: {}]   ;;  %s164_s3 = inlined_call_operand.hbm [shape: f32[2,2,128], index: 3, kind: output, shape index: {}]  }
   0x1   :  { %10 = vsyncpa [#allocation6], 0  ;;  %s104_s12 = smov [#allocation4]   ;;  %s56_s16 = scalar_lea.hbm %s162_s1, 64 }
   0x2   :  { %s16_s13 = sshll.u32 %s104_s12, 4  ;;  %p57_p0 = scmp.ne.s32.totalorder %s162_s1, %s56_s16  ;;  %s17_s13 = int_to_ptr.vmem [resolvable:$true] %s16_s13 }
   0x3   :  { %p60_p1 = scmp.lt.u32.totalorder %s56_s16, %s162_s1 }
   0x5   :  { %p62_p2 = pnand %p60_p1, %p57_p0 }
   0x7   :  { %65 = shalt.err (!%p62_p2)
}
   0x8   :  { %s66_s20 = scalar_lea.vmem %s17_s13, 64  ;;  %p71_p4 = scmp.lt.s32.totalorder %s17_s13, %s17_s13 }
   0x9   :  { %p67_p3 = scmp.ne.s32.totalorder %s17_s13, %s66_s20  ;;  %p72_p5 = scmp.lt.s32.totalorder %s66_s20, %s66_s20 }
   0xb   :  { %p73_p6 = por %p72_p5, %p71_p4 }
   0xd   :  { %p74_p7 = pnand %p73_p6, %p67_p3 }
   0xf   :  { %77 = shalt.err (!%p74_p7)
}
  0x10   :  { %s105_s21 = smov 32   ;;  %s106_s22 = smov 2  }
  0x11   :  { %22 = dma.hbm_to_vmem [thread:$0]  %s162_s1, 64, %s17_s13, [#allocation5], %s105_s21, %s105_s21, %s106_s22  }
  0x12   :  { %100 = dma.done.wait [#allocation5], 64  }
  0x13   :  { %101 = vsyncadd [#allocation5], 4294967232  ;;  %s107_s25 = smov [#allocation7]   ;;  %v28_v0 = vld [vmem:[#allocation4] sm:$0x3] }
  0x14   :  { %s40_s26 = sshll.u32 %s107_s25, 4  ;;  %v30_v1 = vld [vmem:[%s163_s2] sm:$0x3]  ;;  %v29_v2 = vld [vmem:[#allocation4 + $0x2] sm:$0x3]  ;;  %s41_s26 = int_to_ptr.vmem [resolvable:$true] %s40_s26 }
  0x15   :  { %v31_v3 = vadd.f32 %v30_v1, %v28_v0  ;;  %v32_v4 = vadd.f32 %v30_v1, %v29_v2  ;;  %s78_s29 = scalar_lea.vmem %s41_s26, 64  ;;  %p83_p9 = scmp.lt.s32.totalorder %s41_s26, %s41_s26 }
  0x16   :  { %p79_p8 = scmp.ne.s32.totalorder %s41_s26, %s78_s29  ;;  %p84_p10 = scmp.lt.s32.totalorder %s78_s29, %s78_s29 }
  0x17   :  { %33 = vst [vmem:[#allocation7] sm:$0x3] %v31_v3  ;;  %34 = vst [vmem:[#allocation7 + $0x2] sm:$0x3] %v32_v4 }
  0x18   :  { %p85_p11 = por %p84_p10, %p83_p9 }
  0x1a   :  { %p86_p12 = pnand %p85_p11, %p79_p8 }
  0x1c   :  { %89 = shalt.err (!%p86_p12)
}
  0x1d   :  { %s90_s4 = scalar_lea.hbm %s164_s3, 64 }
  0x1e   :  { %p91_p13 = scmp.ne.s32.totalorder %s164_s3, %s90_s4  ;;  %p94_p0 = scmp.lt.u32.totalorder %s90_s4, %s164_s3 }
  0x20   :  { %p96_p1 = pnand %p94_p0, %p91_p13 }
  0x22   :  { %99 = shalt.err (!%p96_p1)
}
  0x23   :  { %46 = dma.vmem_to_hbm [thread:$0]  %s41_s26, 64, %s164_s3, [#allocation6], %s105_s21, %s105_s21, %s106_s22  }
  0x24   :  { %102 = dma.done.wait [#allocation6], 64  }
  0x25   :  { %103 = vsyncadd [#allocation6], 4294967232 }
  0x26   :  { %50 = vsyncpa [#allocation5], 1 }
  0x27   :  { %51 = vsyncpa [#allocation6], 1 }

</bundles_post_ra>
